<compile_context>
chip_gen: v7x
topology: tpu7x:2x2x1
jax: 0.10.0
libtpu: 0.0.40
codegen_flags: <defaults>
</compile_context>

<pallas_src>
import functools
import math

import jax
import jax.numpy as jnp
from jax.experimental import pallas as pl
from jax.experimental.pallas import tpu as pltpu


def _critic_kernel(x_ref, w1_ref, b1_ref, w3_ref, b3_ref, w4_ref, b4_ref, o_ref,
                   *, sub):
    """Fused: out_row = relu(relu(x@W1+b1) @ W3 + b3) . w4 + b4, stored lane-dense."""
    tb = x_ref.shape[0]
    nsub = tb // sub

    # Resident operands: load once per grid step.
    w1 = w1_ref[...]                    # (x_size, y)   bf16 (or f32)
    w3 = w3_ref[...]                    # (y, y)        bf16 (or f32)
    b1 = b1_ref[...]                    # (1, y)        f32
    b3 = b3_ref[...]                    # (1, y)        f32
    w4 = w4_ref[...]                    # (1, y)        f32 (VPU path, no MXU)
    b4 = b4_ref[0]                      # scalar        f32 (SMEM)

    # Statically-unrolled sub-chunk loop: bounds the live range of the f32
    # hidden activations to (sub, y) while the BlockSpec tile keeps DMA big.
    chunks = []
    for s in range(nsub):
        xs = x_ref[pl.ds(s * sub, sub), :].astype(w1.dtype)      # in-kernel cast
        h = jnp.dot(xs, w1, preferred_element_type=jnp.float32) + b1
        h = jnp.maximum(h, 0.0).astype(w3.dtype)
        h = jnp.dot(h, w3, preferred_element_type=jnp.float32) + b3
        h = jnp.maximum(h, 0.0)                                  # (sub, y) f32
        # Final y -> 1 projection: VPU multiply + lane reduction (keeps MXU free).
        chunks.append(jnp.sum(h * w4, axis=-1) + b4)             # (sub,)

    row = chunks[0] if nsub == 1 else jnp.concatenate(chunks, axis=0)   # (tb,)
    # Single lane-dense, unmasked store of the whole tile's results.
    o_ref[...] = row.astype(o_ref.dtype).reshape(1, 1, tb)


def _default_block_b():
    """Generation-tuned default batch tile (rows per grid step)."""
    try:
        kind = jax.devices()[0].device_kind.lower()
    except Exception:
        return 4096
    if "v5" in kind:
        return 2048
    if "v7" in kind:
        return 8192
    return 4096        # v6e and anything else


def _choose_tiles(B, block_b, sub_chunk):
    """Pick (tb, sub): tb multiple of 8 (sublane), balanced across the grid."""
    b8 = ((max(B, 1) + 7) // 8) * 8
    block_b = max(8, (block_b // 8) * 8)
    if b8 <= block_b:
        tb = b8
    else:
        n = pl.cdiv(b8, block_b)                 # number of batch tiles
        tb = ((pl.cdiv(b8, n) + 7) // 8) * 8     # balanced, sublane aligned
        if tb >= sub_chunk:
            tb = pl.cdiv(tb, sub_chunk) * sub_chunk
    sub = sub_chunk if (sub_chunk > 0 and tb % sub_chunk == 0) else tb
    return tb, sub


def critic_linear_forward(x, params, *, block_b=None, sub_chunk=512,
                          use_bf16=True, vmem_limit_bytes=32 * 1024 * 1024):
    """CriticLinear forward. x: (B, x_size) -> (B,)."""
    B, x_size = x.shape
    y_size = params["w1"].shape[1]

    # Batch tile selection (no host-side padding; ragged tail handled by cdiv grid).
    if block_b is None:
        block_b = _default_block_b()
    # Clamp so the double-buffered streamed x tile stays well inside VMEM budget.
    row_bytes = x_size * x.dtype.itemsize
    budget_rows = max(8, (vmem_limit_bytes // 4) // max(row_bytes, 1))
    block_b = int(min(block_b, budget_rows))

    tb, sub = _choose_tiles(B, block_b, sub_chunk)
    assert tb % sub == 0
    num_tiles = pl.cdiv(B, tb)

    mm_dtype = jnp.bfloat16 if use_bf16 else jnp.float32
    w1 = params["w1"].astype(mm_dtype)                       # (x_size, y)
    w3 = params["w3"].astype(mm_dtype)                       # (y, y)
    b1 = params["b1"].astype(jnp.float32).reshape(1, y_size)
    b3 = params["b3"].astype(jnp.float32).reshape(1, y_size)
    w4 = params["w4"].astype(jnp.float32).reshape(1, y_size)  # row vector, f32
    b4 = params["b4"].astype(jnp.float32).reshape(1,)         # scalar -> SMEM

    resident = lambda i: (0, 0)          # weights/biases pinned across the B grid

    out = pl.pallas_call(
        functools.partial(_critic_kernel, sub=sub),
        out_shape=jax.ShapeDtypeStruct((num_tiles, 1, tb), jnp.float32),
        grid=(num_tiles,),
        in_specs=[
            pl.BlockSpec((tb, x_size), lambda i: (i, 0)),     # x streams over B
            pl.BlockSpec((x_size, y_size), resident),         # W1
            pl.BlockSpec((1, y_size), resident),              # b1
            pl.BlockSpec((y_size, y_size), resident),         # W3
            pl.BlockSpec((1, y_size), resident),              # b3
            pl.BlockSpec((1, y_size), resident),              # w4 row
            pl.BlockSpec(memory_space=pltpu.MemorySpace.SMEM),  # b4 scalar
        ],
        out_specs=pl.BlockSpec((1, 1, tb), lambda i: (i, 0, 0)),  # lane-dense row
        compiler_params=pltpu.CompilerParams(
            dimension_semantics=("parallel",),
            vmem_limit_bytes=vmem_limit_bytes),
    )(x, w1, b1, w3, b3, w4, b4)

    return out.reshape(-1)[:B]                                # .squeeze(1)


def init_params(key, x_size, y_size):
    """Mimics nn.Linear default init (uniform(-1/sqrt(fan_in), 1/sqrt(fan_in))).
    Weights stored pre-transposed as (in_features, out_features); w4 as a row."""
    ks = jax.random.split(key, 6)

    def lin(kw, kb, fan_in, fan_out):
        bound = 1.0 / math.sqrt(fan_in)
        w = jax.random.uniform(kw, (fan_in, fan_out), jnp.float32, -bound, bound)
        b = jax.random.uniform(kb, (1, fan_out), jnp.float32, -bound, bound)
        return w, b

    w1, b1 = lin(ks[0], ks[1], x_size, y_size)   # self.w1: Linear(x_size, y_size)
    w3, b3 = lin(ks[2], ks[3], y_size, y_size)   # self.w3: Linear(y_size, y_size)
    w4, b4 = lin(ks[4], ks[5], y_size, 1)        # self.w4: Linear(y_size, 1)
    return {"w1": w1, "b1": b1,
            "w3": w3, "b3": b3,
            "w4": w4.T, "b4": b4}                # w4 kept as (1, y_size) row


def reference_forward(x, p):
    h = jnp.maximum(x @ p["w1"] + p["b1"], 0.0)
    h = jnp.maximum(h @ p["w3"] + p["b3"], 0.0)
    c2 = h @ p["w4"].T + p["b4"]                 # (B, 1)
    return c2[:, 0]


if __name__ == "__main__":
    # Small shapes consistent with the module: batch=16, x_size=32, y_size=128
    # (y_size kept lane-dense = multiple of 128).
    B, X, Y = 16, 32, 128

    key = jax.random.PRNGKey(0)
    k_x, k_p = jax.random.split(key)
    x = jax.random.normal(k_x, (B, X), jnp.float32)
    params = init_params(k_p, X, Y)
    ref = reference_forward(x, params)

    # 1) f32 path (tight tolerance), single batch tile.
    out_f32 = jax.block_until_ready(critic_linear_forward(x, params, use_bf16=False))
    assert out_f32.shape == (B,)
    assert jnp.allclose(out_f32, ref, atol=1e-5, rtol=1e-5)

    # 2) default path: bf16 MXU inputs, f32 accumulation.
    out_bf16 = jax.block_until_ready(critic_linear_forward(x, params))
    assert out_bf16.shape == (B,)
    assert jnp.allclose(out_bf16, ref, atol=8e-2, rtol=8e-2)

    # 3) multi-tile grid with a ragged last block (B % tb != 0, no host padding).
    x13 = x[:13]
    ref13 = reference_forward(x13, params)
    out13 = jax.block_until_ready(
        critic_linear_forward(x13, params, block_b=8, sub_chunk=8, use_bf16=False))
    assert out13.shape == (13,)
    assert jnp.allclose(out13, ref13, atol=1e-5, rtol=1e-5)

    # 4) sub-chunked tile (nsub > 1) exercising the unrolled chunk loop + concat.
    out_sub = jax.block_until_ready(
        critic_linear_forward(x, params, block_b=16, sub_chunk=8, use_bf16=False))
    assert jnp.allclose(out_sub, ref, atol=1e-5, rtol=1e-5)

    print("KERNEL_OK")
</pallas_src>

<mosaic_0001>
module attributes {stable_mosaic.version = 11 : i64} {
  func.func @_critic_kernel(%arg0: i32, %arg1: memref<16x32xf32, #tpu.memory_space<vmem>>, %arg2: memref<32x128xf32, #tpu.memory_space<vmem>>, %arg3: memref<1x128xf32, #tpu.memory_space<vmem>>, %arg4: memref<128x128xf32, #tpu.memory_space<vmem>>, %arg5: memref<1x128xf32, #tpu.memory_space<vmem>>, %arg6: memref<1x128xf32, #tpu.memory_space<vmem>>, %arg7: memref<1xf32, #tpu.memory_space<smem>>, %arg8: memref<1x1x16xf32, #tpu.memory_space<vmem>>) attributes {dimension_semantics = [#tpu.dimension_semantics<parallel>], iteration_bounds = array<i64: 1>, scalar_prefetch = 0 : i64, scratch_operands = 0 : i64, tpu.core_type = #tpu.core_type<tc>, window_params = [{transform_indices = @transform_0, window_bounds = array<i64: 16, 32>}, {pipeline_mode = #tpu.pipeline_mode<synchronous>, transform_indices = @transform_1, window_bounds = array<i64: 32, 128>}, {pipeline_mode = #tpu.pipeline_mode<synchronous>, transform_indices = @transform_2, window_bounds = array<i64: 1, 128>}, {pipeline_mode = #tpu.pipeline_mode<synchronous>, transform_indices = @transform_3, window_bounds = array<i64: 128, 128>}, {pipeline_mode = #tpu.pipeline_mode<synchronous>, transform_indices = @transform_4, window_bounds = array<i64: 1, 128>}, {pipeline_mode = #tpu.pipeline_mode<synchronous>, transform_indices = @transform_5, window_bounds = array<i64: 1, 128>}, {transform_indices = @transform_6, window_bounds = array<i64: 1>}, {transform_indices = @transform_7, window_bounds = array<i64: 1, 1, 16>}]} {
    %c0 = arith.constant 0 : index
    %c0_0 = arith.constant 0 : index
    %0 = vector.load %arg2[%c0, %c0_0] : memref<32x128xf32, #tpu.memory_space<vmem>>, vector<32x128xf32>
    %c0_1 = arith.constant 0 : index
    %c0_2 = arith.constant 0 : index
    %1 = vector.load %arg4[%c0_1, %c0_2] : memref<128x128xf32, #tpu.memory_space<vmem>>, vector<128x128xf32>
    %c0_3 = arith.constant 0 : index
    %c0_4 = arith.constant 0 : index
    %2 = vector.load %arg3[%c0_3, %c0_4] : memref<1x128xf32, #tpu.memory_space<vmem>>, vector<1x128xf32>
    %c0_5 = arith.constant 0 : index
    %c0_6 = arith.constant 0 : index
    %3 = vector.load %arg5[%c0_5, %c0_6] : memref<1x128xf32, #tpu.memory_space<vmem>>, vector<1x128xf32>
    %c0_7 = arith.constant 0 : index
    %c0_8 = arith.constant 0 : index
    %4 = vector.load %arg6[%c0_7, %c0_8] : memref<1x128xf32, #tpu.memory_space<vmem>>, vector<1x128xf32>
    %c0_9 = arith.constant 0 : index
    %5 = memref.load %arg7[%c0_9] : memref<1xf32, #tpu.memory_space<smem>>
    %c0_10 = arith.constant 0 : index
    %c0_11 = arith.constant 0 : index
    %6 = vector.load %arg1[%c0_10, %c0_11] : memref<16x32xf32, #tpu.memory_space<vmem>>, vector<16x32xf32>
    %cst = arith.constant dense<0.000000e+00> : vector<16x128xf32>
    %7 = tpu.matmul %6, %0, %cst {dimension_numbers = #tpu.dot_dimension_numbers<[1], [0], [0], [1], [0, 0, 1, 1], [], []>} : vector<16x32xf32>, vector<32x128xf32>, vector<16x128xf32> -> vector<16x128xf32>
    %8 = vector.broadcast %2 : vector<1x128xf32> to vector<16x128xf32>
    %9 = arith.addf %7, %8 : vector<16x128xf32>
    %cst_12 = arith.constant 0.000000e+00 : f32
    %10 = vector.broadcast %cst_12 : f32 to vector<16x128xf32>
    %11 = arith.maximumf %9, %10 : vector<16x128xf32>
    %cst_13 = arith.constant dense<0.000000e+00> : vector<16x128xf32>
    %12 = tpu.matmul %11, %1, %cst_13 {dimension_numbers = #tpu.dot_dimension_numbers<[1], [0], [0], [1], [0, 0, 1, 1], [], []>} : vector<16x128xf32>, vector<128x128xf32>, vector<16x128xf32> -> vector<16x128xf32>
    %13 = vector.broadcast %3 : vector<1x128xf32> to vector<16x128xf32>
    %14 = arith.addf %12, %13 : vector<16x128xf32>
    %cst_14 = arith.constant 0.000000e+00 : f32
    %15 = vector.broadcast %cst_14 : f32 to vector<16x128xf32>
    %16 = arith.maximumf %14, %15 : vector<16x128xf32>
    %17 = vector.broadcast %4 : vector<1x128xf32> to vector<16x128xf32>
    %18 = arith.mulf %16, %17 : vector<16x128xf32>
    %cst_15 = arith.constant dense<0.000000e+00> : vector<16xf32>
    %19 = vector.multi_reduction <add>, %18, %cst_15 [1] : vector<16x128xf32> to vector<16xf32>
    %20 = vector.broadcast %5 : f32 to vector<16xf32>
    %21 = arith.addf %19, %20 : vector<16xf32>
    %22 = vector.shape_cast %21 : vector<16xf32> to vector<1x1x16xf32>
    %c0_16 = arith.constant 0 : index
    %c0_17 = arith.constant 0 : index
    %c0_18 = arith.constant 0 : index
    %23 = vector.load %arg8[%c0_16, %c0_17, %c0_18] : memref<1x1x16xf32, #tpu.memory_space<vmem>>, vector<1x1x16xf32>
    tpu.vector_store %arg8[%c0_16, %c0_17, %c0_18], %22 {strides = array<i32>} : memref<1x1x16xf32, #tpu.memory_space<vmem>>, vector<1x1x16xf32>,
    return
  }
  func.func @transform_0(%arg0: i32) -> (i32, i32) {
    %c0_i32 = arith.constant 0 : i32
    %c0_i32_0 = arith.constant 0 : i32
    return %arg0, %c0_i32 : i32, i32
  }
  func.func @transform_1(%arg0: i32) -> (i32, i32) {
    %c0_i32 = arith.constant 0 : i32
    %c0_i32_0 = arith.constant 0 : i32
    %c0_i32_1 = arith.constant 0 : i32
    return %c0_i32, %c0_i32_0 : i32, i32
  }
  func.func @transform_2(%arg0: i32) -> (i32, i32) {
    %c0_i32 = arith.constant 0 : i32
    %c0_i32_0 = arith.constant 0 : i32
    %c0_i32_1 = arith.constant 0 : i32
    return %c0_i32, %c0_i32_0 : i32, i32
  }
  func.func @transform_3(%arg0: i32) -> (i32, i32) {
    %c0_i32 = arith.constant 0 : i32
    %c0_i32_0 = arith.constant 0 : i32
    %c0_i32_1 = arith.constant 0 : i32
    return %c0_i32, %c0_i32_0 : i32, i32
  }
  func.func @transform_4(%arg0: i32) -> (i32, i32) {
    %c0_i32 = arith.constant 0 : i32
    %c0_i32_0 = arith.constant 0 : i32
    %c0_i32_1 = arith.constant 0 : i32
    return %c0_i32, %c0_i32_0 : i32, i32
  }
  func.func @transform_5(%arg0: i32) -> (i32, i32) {
    %c0_i32 = arith.constant 0 : i32
    %c0_i32_0 = arith.constant 0 : i32
    %c0_i32_1 = arith.constant 0 : i32
    return %c0_i32, %c0_i32_0 : i32, i32
  }
  func.func @transform_6(%arg0: i32) -> i32 {
    %c0_i32 = arith.constant 0 : i32
    %c0_i32_0 = arith.constant 0 : i32
    return %c0_i32 : i32
  }
  func.func @transform_7(%arg0: i32) -> (i32, i32, i32) {
    %c0_i32 = arith.constant 0 : i32
    %c0_i32_0 = arith.constant 0 : i32
    %c0_i32_1 = arith.constant 0 : i32
    return %arg0, %c0_i32, %c0_i32_0 : i32, i32, i32
  }
}

</mosaic_0001>

<bundles_post_ra>
// kernel: tpu_custom_call.1
= control target key start
LH: loop header
LB: loop body
LE: loop exit
PB: predicated region body
PF: predicated region fallthrough
CT: control target
= control target key end

     0   :  { %13 = vsyncpa [#allocation4], 0  ;;  %s656_s0 = inlined_call_operand.hbm [shape: f32[16,32], index: 0, kind: input, shape index: {}]   ;;  %s657_s1 = inlined_call_operand.hbm [shape: f32[32,128], index: 1, kind: input, shape index: {}]   ;;  %s658_s2 = inlined_call_operand.vmem [shape: f32[1,128], index: 2, kind: input, shape index: {}]   ;;  %s659_s3 = inlined_call_operand.hbm [shape: f32[128,128], index: 3, kind: input, shape index: {}]   ;;  %s660_s4 = inlined_call_operand.vmem [shape: f32[1,128], index: 4, kind: input, shape index: {}]   ;;  %s661_s5 = inlined_call_operand.vmem [shape: f32[1,128], index: 5, kind: input, shape index: {}]   ;;  %s662_s6 = inlined_call_operand.<no memory space> [shape: f32[1], index: 6, kind: input, shape index: {}]   ;;  %s663_s7 = inlined_call_operand.hbm [shape: f32[1,1,16], index: 7, kind: output, shape index: {}]  }
   0x1   :  { %14 = vsyncpa [#allocation7], 0 }
   0x2   :  { %15 = vsyncpa [#allocation5], 0  ;;  %s532_s24 = smov [#allocation6]   ;;  %s533_s26 = smov [#allocation3]  }
   0x3   :  { %s33_s25 = sshll.u32 %s532_s24, 4  ;;  %s21_s27 = sshll.u32 %s533_s26, 4  ;;  %s34_s25 = int_to_ptr.vmem [resolvable:$true] %s33_s25  ;;  %s578_s27 = int_to_ptr.vmem [resolvable:$true] %s21_s27 }
   0x4   :  { %s438_s30 = scalar_lea.hbm %s657_s1, 512 }
   0x5   :  { %p439_p0 = scmp.ne.s32.totalorder %s657_s1, %s438_s30  ;;  %p442_p1 = scmp.lt.u32.totalorder %s438_s30, %s657_s1 }
   0x7   :  { %p444_p2 = pnand %p442_p1, %p439_p0 }
   0x9   :  { %447 = shalt.err (!%p444_p2)
}
   0xa   :  { %s448_s12 = scalar_lea.vmem %s34_s25, 512  ;;  %p453_p4 = scmp.lt.s32.totalorder %s34_s25, %s34_s25 }
   0xb   :  { %p449_p3 = scmp.ne.s32.totalorder %s34_s25, %s448_s12  ;;  %p454_p5 = scmp.lt.s32.totalorder %s448_s12, %s448_s12 }
   0xd   :  { %p455_p6 = por %p454_p5, %p453_p4 }
   0xf   :  { %p456_p7 = pnand %p455_p6, %p449_p3 }
  0x11   :  { %459 = shalt.err (!%p456_p7)
}
  0x12   :  { %s534_s13 = smov 128   ;;  %s535_s14 = smov 8  }
  0x13   :  { %39 = dma.hbm_to_vmem [thread:$0]  %s657_s1, 512, %s34_s25, [#allocation7], %s534_s13, %s534_s13, %s535_s14  }
  0x14   :  { %s460_s19 = scalar_lea.hbm %s656_s0, 256 }
  0x15   :  { %p461_p8 = scmp.ne.s32.totalorder %s656_s0, %s460_s19  ;;  %p464_p9 = scmp.lt.u32.totalorder %s460_s19, %s656_s0 }
  0x17   :  { %p466_p10 = pnand %p464_p9, %p461_p8 }
  0x19   :  { %469 = shalt.err (!%p466_p10)
}
  0x1a   :  { %s470_s24 = scalar_lea.vmem %s578_s27, 256  ;;  %p475_p12 = scmp.lt.s32.totalorder %s578_s27, %s578_s27 }
  0x1b   :  { %p471_p11 = scmp.ne.s32.totalorder %s578_s27, %s470_s24  ;;  %p476_p13 = scmp.lt.s32.totalorder %s470_s24, %s470_s24 }
  0x1d   :  { %p477_p0 = por %p476_p13, %p475_p12 }
  0x1f   :  { %p478_p1 = pnand %p477_p0, %p471_p11 }
  0x21   :  { %481 = shalt.err (!%p478_p1)
}
  0x22   :  { %27 = dma.hbm_to_vmem [thread:$0]  %s656_s0, 256, %s578_s27, [#allocation4], %s534_s13, %s534_s13, %s535_s14  }
  0x23   :  { %s536_s26 = smov [#allocation8]   ;;  %s482_s8 = scalar_lea.hbm %s659_s3, 2048 }
  0x24   :  { %s47_s28 = sshll.u32 %s536_s26, 4  ;;  %p483_p2 = scmp.ne.s32.totalorder %s659_s3, %s482_s8  ;;  %s48_s28 = int_to_ptr.vmem [resolvable:$true] %s47_s28 }
  0x25   :  { %p486_p3 = scmp.lt.u32.totalorder %s482_s8, %s659_s3 }
  0x27   :  { %p488_p4 = pnand %p486_p3, %p483_p2 }
  0x29   :  { %491 = shalt.err (!%p488_p4)
}
  0x2a   :  { %s492_s15 = scalar_lea.vmem %s48_s28, 2048  ;;  %p497_p6 = scmp.lt.s32.totalorder %s48_s28, %s48_s28 }
  0x2b   :  { %p493_p5 = scmp.ne.s32.totalorder %s48_s28, %s492_s15  ;;  %p498_p7 = scmp.lt.s32.totalorder %s492_s15, %s492_s15 }
  0x2d   :  { %p499_p8 = por %p498_p7, %p497_p6 }
  0x2f   :  { %p500_p9 = pnand %p499_p8, %p493_p5 }
  0x31   :  { %503 = shalt.err (!%p500_p9)
}
  0x32   :  { %53 = dma.hbm_to_vmem [thread:$0]  %s659_s3, 2048, %s48_s28, [#allocation7], %s534_s13, %s534_s13, %s535_s14  }
  0x33   :  { %526 = dma.done.wait [#allocation4], 256  }
  0x34   :  { %527 = vsyncadd [#allocation4], 4294967040 }
  0x35   :  { %528 = dma.done.wait [#allocation7], 2560  }
  0x36   :  { %529 = vsyncadd [#allocation7], 4294964736  ;;  %vm101_vm0 = vcmask 261120   ;;  %v69_v0 = vld [vmem:[#allocation6] sm:$0xff]  ;;  %v70_v1 = vld [vmem:[#allocation6 + $0x8] sm:$0xff]  ;;  %v285_v49 = vlaneseq  ;;  %v280_v53 = vstv %s662_s6  ;;  %vm296_vm1 = vcmask 130112  }
  0x37   :  { %v71_v2 = vld [vmem:[#allocation6 + $0x10] sm:$0xff]  ;;  %v392_v3 = vpack.c.bf16 %v70_v1, %v69_v0  ;;  %v72_v4 = vld [vmem:[#allocation6 + $0x18] sm:$0xff]  ;;  %v73_v7 = vld [vmem:[#allocation8] sm:$0xff]  ;;  %vm299_vm2 = vcmask 122880  }
  0x38   :  { %v93_v5 = vld [vmem:[#allocation3] sm:$0xff]  ;;  %v396_v6 = vpack.c.bf16 %v72_v4, %v71_v2  ;;  %v74_v8 = vld [vmem:[#allocation8 + $0x8] sm:$0xff]  ;;  %v76_v11 = vld [vmem:[#allocation8 + $0x18] sm:$0xff]  ;;  %v286_v50 = vand.u32 127, %v285_v49  ;;  %v288_v51 = vshrl.u32 %v285_v49, 7 }
  0x39   :  { %354 = vmatprep.mubr.msk.f32.mxu0 %vm101_vm0, %v93_v5  ;;  %v75_v9 = vld [vmem:[#allocation8 + $0x10] sm:$0xff]  ;;  %393 = vmatprep.subr.bf16.mxu0 %v392_v3  ;;  %v400_v10 = vpack.c.bf16 %v74_v8, %v73_v7  ;;  %v77_v13 = vld [vmem:[#allocation8 + $0x20] sm:$0xff]  ;;  %v78_v14 = vld [vmem:[#allocation8 + $0x28] sm:$0xff] }
  0x3a   :  { %395 = vmatpush3.bf16.msra.mxu0 %v392_v3  ;;  %v404_v12 = vpack.c.bf16 %v76_v11, %v75_v9  ;;  %v408_v15 = vpack.c.bf16 %v78_v14, %v77_v13  ;;  %v94_v16 = vld [vmem:[#allocation3 + $0x8] sm:$0xff]  ;;  %v79_v17 = vld [vmem:[#allocation8 + $0x30] sm:$0xff]  ;;  %v81_v20 = vld [vmem:[#allocation8 + $0x40] sm:$0xff]  ;;  %v291_v52 = vadd.s32 4294967288, %v286_v50  ;;  %v289_v55 = vsub.s32 %v286_v50, %v288_v51 }
  0x3b   :  { %397 = vmatprep.subr.bf16.mxu0 %v396_v6  ;;  %401 = vmatprep.subr.bf16.mxu1 %v400_v10  ;;  %v80_v18 = vld [vmem:[#allocation8 + $0x38] sm:$0xff]  ;;  %v82_v21 = vld [vmem:[#allocation8 + $0x48] sm:$0xff]  ;;  %v83_v23 = vld [vmem:[#allocation8 + $0x50] sm:$0xff] }
  0x3c   :  { %403 = vmatpush3.bf16.msra.mxu1 %v400_v10  ;;  %v412_v19 = vpack.c.bf16 %v80_v18, %v79_v17  ;;  %v416_v22 = vpack.c.bf16 %v82_v21, %v81_v20  ;;  %v84_v24 = vld [vmem:[#allocation8 + $0x58] sm:$0xff]  ;;  %v85_v26 = vld [vmem:[#allocation8 + $0x60] sm:$0xff]  ;;  %v86_v27 = vld [vmem:[#allocation8 + $0x68] sm:$0xff]  ;;  %v294_v57 = vsub.s32 %v291_v52, %v288_v51 }
  0x3d   :  { %405 = vmatprep.subr.bf16.mxu1 %v404_v12  ;;  %v420_v25 = vpack.c.bf16 %v84_v24, %v83_v23  ;;  %v424_v28 = vpack.c.bf16 %v86_v27, %v85_v26  ;;  %v87_v29 = vld [vmem:[#allocation8 + $0x70] sm:$0xff]  ;;  %v88_v30 = vld [vmem:[#allocation8 + $0x78] sm:$0xff] }
  0x3e   :  { %399 = vmatpush3.bf16.msra.mxu0 %v396_v6  ;;  %v428_v31 = vpack.c.bf16 %v88_v30, %v87_v29  ;;  %v317_v32 = vld [vmem:[%s658_s2] ss:$0 sm:$0xff] }
  0x3f   :  { %v320_v39 = vld [vmem:[%s660_s4] ss:$0 sm:$0xff] }
  0x40   :  { %407 = vmatpush3.bf16.msra.mxu1 %v404_v12  ;;  %v321_v44 = vld [vmem:[%s661_s5] ss:$0 sm:$0xff]  ;;  %s537_s5 = smov [#allocation9]  }
  0x41   :  { %355 = vmatmul.mubr.msk.f32.vlgmr.msra.gmra.mrb[0].mxu0 %vm101_vm0, %v94_v16  ;;  %409 = vmatprep.subr.bf16.mxu1 %v408_v15  ;;  %s307_s19 = sshll.u32 %s537_s5, 4  ;;  %s308_s19 = int_to_ptr.vmem [resolvable:$true] %s307_s19 }
  0x42   :  { %s504_s20 = scalar_lea.vmem %s308_s19, 16  ;;  %s508_s21 = scalar_lea.vmem %s308_s19, 32 }
  0x43   :  { %p505_p10 = scmp.ne.s32.totalorder %s308_s19, %s504_s20  ;;  %p509_p11 = scmp.lt.s32.totalorder %s308_s19, %s308_s19 }
  0x44   :  { %411 = vmatpush3.bf16.msra.mxu1 %v408_v15  ;;  %p510_p12 = scmp.lt.s32.totalorder %s508_s21, %s504_s20 }
  0x45   :  { %413 = vmatprep.subr.bf16.mxu1 %v412_v19 }
  0x46   :  { %p511_p13 = por %p510_p12, %p509_p11 }
  0x48   :  { %415 = vmatpush3.bf16.msra.mxu1 %v412_v19  ;;  %p512_p0 = pnand %p511_p13, %p505_p10 }
  0x49   :  { %417 = vmatprep.subr.bf16.mxu1 %v416_v22 }
  0x4c   :  { %419 = vmatpush3.bf16.msra.mxu1 %v416_v22 }
  0x4d   :  { %421 = vmatprep.subr.bf16.mxu1 %v420_v25 }
  0x50   :  { %423 = vmatpush3.bf16.msra.mxu1 %v420_v25 }
  0x51   :  { %425 = vmatprep.subr.bf16.mxu1 %v424_v28 }
  0x54   :  { %427 = vmatpush3.bf16.msra.mxu1 %v424_v28 }
  0x55   :  { %429 = vmatprep.subr.bf16.mxu1 %v428_v31 }
  0x58   :  { %431 = vmatpush3.bf16.msra.mxu1 %v428_v31 }
 0x114   :  { %v356_v33 = vpop.f32.mrb[0].mxu0 }
 0x115   :  { %v180_v34 = vadd.f32 %v356_v33, %v317_v32  ;;  %v174_v35 = vpop.f32.mrb[1].mxu0 }
 0x116   :  { %v175_v36 = vadd.f32 %v317_v32, %v174_v35 }
 0x117   :  { %v184_v38 = vmax.f32 %v180_v34, 0.0 }
 0x118   :  { %v183_v37 = vmax.f32 %v175_v36, 0.0 }
 0x11a   :  { %389 = vmatprep.mubr.f32.mxu1 %v183_v37 }
 0x11b   :  { %390 = vmatmul.mubr.f32.vlgmr.msra.gmra.mrb[0].mxu1 %v184_v38 }
 0x1ee   :  { %v391_v40 = vpop.f32.mrb[0].mxu1 }
 0x1ef   :  { %v257_v41 = vpop.f32.mrb[1].mxu1  ;;  %v263_v42 = vadd.f32 %v391_v40, %v320_v39 }
 0x1f0   :  { %v258_v43 = vadd.f32 %v320_v39, %v257_v41 }
 0x1f1   :  { %v267_v46 = vmax.f32 %v263_v42, 0.0 }
 0x1f2   :  { %v266_v45 = vmax.f32 %v258_v43, 0.0 }
 0x1f3   :  { %v275_v48 = vmul.f32 %v321_v44, %v267_v46 }
 0x1f4   :  { %v274_v47 = vmul.f32 %v321_v44, %v266_v45 }
 0x1f6   :  { %276 = vadd.xlane.f32.xlu0 %v274_v47 }
 0x1fa   :  { %278 = vadd.xlane.f32.xlu0 %v275_v48 }
 0x283   :  { %v277_v54 = vpop.xlane.xlu0 %276 }
 0x284   :  { %v281_v56 = vadd.f32 %v280_v53, %v277_v54 }
 0x286   :  { %v290_v60 = vrot.slane %v281_v56, %v289_v55 }
 0x287   :  { %v279_v58 = vpop.xlane.xlu0 %278 }
 0x288   :  { %v282_v59 = vadd.f32 %v280_v53, %v279_v58 }
 0x28a   :  { %v295_v61 = vrot.slane %v282_v59, %v294_v57 }
 0x28c   :  { %v297_v62 = vsel %vm296_vm1, %v295_v61, %v290_v60 }
 0x28d   :  { %300 = vst.msk [vmem:[#allocation9] sm:$0x1] %vm299_vm2, %v297_v62 }
 0x28e   :  { %515 = shalt.err (!%p512_p0)
}
 0x28f   :  { %s516_s23 = scalar_lea.hbm %s663_s7, 16 }
 0x290   :  { %p517_p1 = scmp.ne.s32.totalorder %s663_s7, %s516_s23  ;;  %p520_p2 = scmp.lt.u32.totalorder %s516_s23, %s663_s7 }
 0x292   :  { %p522_p3 = pnand %p520_p2, %p517_p1 }
 0x294   :  { %525 = shalt.err (!%p522_p3)
}
 0x295   :  { %310 = dma.vmem_to_hbm [thread:$0]  %s308_s19, 16, %s663_s7, [#allocation5]  }
 0x296   :  { %530 = dma.done.wait [#allocation5], 16  }
 0x297   :  { %531 = vsyncadd [#allocation5], 4294967280 }
 0x298   :  { %314 = vsyncpa [#allocation4], 1 }
 0x299   :  { %315 = vsyncpa [#allocation7], 1 }
 0x29a   :  { %316 = vsyncpa [#allocation5], 1 }

</bundles_post_ra>
